<compile_context>
chip_gen: v7x
topology: tpu7x:2x2x1
jax: 0.10.0
libtpu: 0.0.40
codegen_flags: <defaults>
</compile_context>

<pallas_src>
import jax
import jax.numpy as jnp
from jax import lax
from jax.experimental import pallas as pl
from jax.experimental.pallas import tpu as pltpu


def _linear_kernel(x_ref, w_ref, b_ref, o_ref, acc_ref):
    # x_ref  : [tm, tk]  block of input rows
    # w_ref  : [tn, tk]  block of weight in PyTorch [out, in] layout
    # b_ref  : [1,  tn]  bias tile for this N block
    # o_ref  : [tm, tn]  output block
    # acc_ref: [tm, tn]  f32 accumulator scratch (persists across K steps)
    k = pl.program_id(2)

    @pl.when(k == 0)
    def _():
        # Fold the bias add into the accumulator init.
        acc_ref[...] = jnp.broadcast_to(
            b_ref[...].astype(jnp.float32), acc_ref.shape)

    # x[tm, tk] . W[tn, tk]^T -> [tm, tn]; contract last dims of both so the
    # MXU consumes W directly in PyTorch layout (no transpose needed).
    acc_ref[...] += lax.dot_general(
        x_ref[...], w_ref[...],
        dimension_numbers=(((1,), (1,)), ((), ())),
        preferred_element_type=jnp.float32,
    )

    @pl.when(k == pl.num_programs(2) - 1)
    def _():
        o_ref[...] = acc_ref[...].astype(o_ref.dtype)


def _round_up(x, m):
    return ((x + m - 1) // m) * m


def linear_forward(x, weight, bias, *, tm=None, tn=None, tk=None,
                   vmem_limit_bytes=64 * 1024 * 1024):
    """nn.Linear forward.

    x:      [..., K]  (any leading batch dims)
    weight: [N, K]    (PyTorch layout, NOT transposed)
    bias:   [N]
    returns [..., N]
    """
    orig_shape = x.shape
    K = orig_shape[-1]
    x2 = x.reshape(-1, K)
    M = x2.shape[0]
    N, K2 = weight.shape
    assert K == K2, "weight in_features mismatch"
    out_dtype = x.dtype

    # Tile selection: lane-dense N/K tiles (multiples of 128), 8-aligned M
    # tiles, capped so 2x-double-buffered inputs + f32 acc fit comfortably
    # in scoped VMEM on all of v5e (16 MiB default) / v6e / v7x.
    if tm is None:
        tm = min(_round_up(M, 8), 256)
    if tn is None:
        tn = min(_round_up(N, 128), 512)
    if tk is None:
        tk = min(_round_up(K, 128), 512)

    Mp, Np, Kp = _round_up(M, tm), _round_up(N, tn), _round_up(K, tk)

    # Zero-pad to tile multiples (ragged-shape handling without asserts).
    x_p = x2 if (Mp == M and Kp == K) else jnp.pad(
        x2, ((0, Mp - M), (0, Kp - K)))
    w_p = weight if (Np == N and Kp == K) else jnp.pad(
        weight, ((0, Np - N), (0, Kp - K)))
    b_p = bias if Np == N else jnp.pad(bias, (0, Np - N))
    b2 = b_p.reshape(1, Np)

    grid = (Mp // tm, Np // tn, Kp // tk)

    itemsize = jnp.dtype(out_dtype).itemsize
    cost = pl.CostEstimate(
        flops=2 * M * N * K,
        transcendentals=0,
        bytes_accessed=(x2.size * jnp.dtype(x2.dtype).itemsize
                        + weight.size * jnp.dtype(weight.dtype).itemsize
                        + bias.size * jnp.dtype(bias.dtype).itemsize
                        + M * N * itemsize),
    )

    out_p = pl.pallas_call(
        _linear_kernel,
        out_shape=jax.ShapeDtypeStruct((Mp, Np), out_dtype),
        grid_spec=pltpu.PrefetchScalarGridSpec(
            num_scalar_prefetch=0,
            grid=grid,
            in_specs=[
                pl.BlockSpec((tm, tk), lambda i, j, k: (i, k)),  # x rows
                pl.BlockSpec((tn, tk), lambda i, j, k: (j, k)),  # W [N,K] tile
                pl.BlockSpec((1, tn), lambda i, j, k: (0, j)),   # bias tile
            ],
            out_specs=pl.BlockSpec((tm, tn), lambda i, j, k: (i, j)),
            scratch_shapes=[pltpu.VMEM((tm, tn), jnp.float32)],
        ),
        compiler_params=pltpu.CompilerParams(
            dimension_semantics=("parallel", "parallel", "arbitrary"),
            vmem_limit_bytes=vmem_limit_bytes,
        ),
        cost_estimate=cost,
    )(x_p, w_p, b2)

    out = out_p[:M, :N]
    return out.reshape(orig_shape[:-1] + (N,))


if __name__ == "__main__":
    # Small shapes consistent with nn.Linear(input_size, output_size)
    batch = 8
    input_size = 32
    output_size = 16

    key = jax.random.PRNGKey(0)
    kx, kw, kb = jax.random.split(key, 3)

    x = jax.random.normal(kx, (batch, input_size), dtype=jnp.float32)
    # Deterministic parameter init mimicking nn.Linear uniform(-1/sqrt(K), 1/sqrt(K))
    bound = 1.0 / (input_size ** 0.5)
    weight = jax.random.uniform(
        kw, (output_size, input_size), minval=-bound, maxval=bound,
        dtype=jnp.float32)
    bias = jax.random.uniform(
        kb, (output_size,), minval=-bound, maxval=bound, dtype=jnp.float32)

    out = linear_forward(x, weight, bias)
    jax.block_until_ready(out)

    # Reference check against plain JAX (same math as torch nn.Linear forward)
    ref = x @ weight.T + bias
    assert out.shape == ref.shape, "shape mismatch vs reference"
    assert jnp.allclose(out, ref, atol=1e-5, rtol=1e-5), "mismatch vs reference"

    # Also exercise the tiled path with a larger, ragged, multi-K-step shape.
    M2, K2_, N2 = 300, 640, 384
    kx2, kw2, kb2 = jax.random.split(jax.random.PRNGKey(1), 3)
    x2 = jax.random.normal(kx2, (M2, K2_), dtype=jnp.float32)
    w2 = jax.random.normal(kw2, (N2, K2_), dtype=jnp.float32) * 0.05
    b2_ = jax.random.normal(kb2, (N2,), dtype=jnp.float32)
    out2 = linear_forward(x2, w2, b2_)
    jax.block_until_ready(out2)
    ref2 = x2 @ w2.T + b2_
    assert jnp.allclose(out2, ref2, atol=1e-3, rtol=1e-3), "mismatch (tiled)"

    print("KERNEL_OK")
</pallas_src>

<mosaic_0001>
module attributes {stable_mosaic.version = 11 : i64} {
  func.func @_linear_kernel(%arg0: i32, %arg1: i32, %arg2: i32, %arg3: memref<8x128xf32, #tpu.memory_space<vmem>>, %arg4: memref<128x128xf32, #tpu.memory_space<vmem>>, %arg5: memref<1x128xf32, #tpu.memory_space<vmem>>, %arg6: memref<8x128xf32, #tpu.memory_space<vmem>>, %arg7: memref<8x128xf32, #tpu.memory_space<vmem>>) attributes {dimension_semantics = [#tpu.dimension_semantics<parallel>, #tpu.dimension_semantics<parallel>, #tpu.dimension_semantics<arbitrary>], iteration_bounds = array<i64: 1, 1, 1>, scalar_prefetch = 0 : i64, scratch_operands = 1 : i64, tpu.core_type = #tpu.core_type<tc>, window_params = [{transform_indices = @transform_0, window_bounds = array<i64: 8, 128>}, {transform_indices = @transform_1, window_bounds = array<i64: 128, 128>}, {transform_indices = @transform_2, window_bounds = array<i64: 1, 128>}, {transform_indices = @transform_3, window_bounds = array<i64: 8, 128>}]} {
    %c0_i32 = arith.constant 0 : i32
    %0 = arith.cmpi eq, %arg2, %c0_i32 : i32
    %1 = arith.extui %0 : i1 to i32
    %c0_i32_0 = arith.constant 0 : i32
    %2 = arith.cmpi ne, %1, %c0_i32_0 : i32
    scf.if %2 {
      %c0_10 = arith.constant 0 : index
      %c0_11 = arith.constant 0 : index
      %12 = vector.load %arg5[%c0_10, %c0_11] : memref<1x128xf32, #tpu.memory_space<vmem>>, vector<1x128xf32>
      %13 = vector.shape_cast %12 : vector<1x128xf32> to vector<1x128xf32>
      %14 = vector.broadcast %13 : vector<1x128xf32> to vector<8x128xf32>
      %c0_12 = arith.constant 0 : index
      %c0_13 = arith.constant 0 : index
      %15 = vector.load %arg7[%c0_12, %c0_13] : memref<8x128xf32, #tpu.memory_space<vmem>>, vector<8x128xf32>
      tpu.vector_store %arg7[%c0_12, %c0_13], %14 {strides = array<i32>} : memref<8x128xf32, #tpu.memory_space<vmem>>, vector<8x128xf32>,
    } else {
    }
    %c0 = arith.constant 0 : index
    %c0_1 = arith.constant 0 : index
    %3 = vector.load %arg7[%c0, %c0_1] : memref<8x128xf32, #tpu.memory_space<vmem>>, vector<8x128xf32>
    %c0_2 = arith.constant 0 : index
    %c0_3 = arith.constant 0 : index
    %4 = vector.load %arg3[%c0_2, %c0_3] : memref<8x128xf32, #tpu.memory_space<vmem>>, vector<8x128xf32>
    %c0_4 = arith.constant 0 : index
    %c0_5 = arith.constant 0 : index
    %5 = vector.load %arg4[%c0_4, %c0_5] : memref<128x128xf32, #tpu.memory_space<vmem>>, vector<128x128xf32>
    %cst = arith.constant dense<0.000000e+00> : vector<8x128xf32>
    %6 = tpu.matmul %4, %5, %cst {dimension_numbers = #tpu.dot_dimension_numbers<[1], [1], [0], [0], [0, 0, 1, 0], [], []>} : vector<8x128xf32>, vector<128x128xf32>, vector<8x128xf32> -> vector<8x128xf32>
    %7 = arith.addf %3, %6 : vector<8x128xf32>
    %c0_6 = arith.constant 0 : index
    %c0_7 = arith.constant 0 : index
    %8 = vector.load %arg7[%c0_6, %c0_7] : memref<8x128xf32, #tpu.memory_space<vmem>>, vector<8x128xf32>
    tpu.vector_store %arg7[%c0_6, %c0_7], %7 {strides = array<i32>} : memref<8x128xf32, #tpu.memory_space<vmem>>, vector<8x128xf32>,
    %c0_i32_8 = arith.constant 0 : i32
    %9 = arith.cmpi eq, %arg2, %c0_i32_8 : i32
    %10 = arith.extui %9 : i1 to i32
    %c0_i32_9 = arith.constant 0 : i32
    %11 = arith.cmpi ne, %10, %c0_i32_9 : i32
    scf.if %11 {
      %c0_10 = arith.constant 0 : index
      %c0_11 = arith.constant 0 : index
      %12 = vector.load %arg7[%c0_10, %c0_11] : memref<8x128xf32, #tpu.memory_space<vmem>>, vector<8x128xf32>
      %c0_12 = arith.constant 0 : index
      %c0_13 = arith.constant 0 : index
      %13 = vector.load %arg6[%c0_12, %c0_13] : memref<8x128xf32, #tpu.memory_space<vmem>>, vector<8x128xf32>
      tpu.vector_store %arg6[%c0_12, %c0_13], %12 {strides = array<i32>} : memref<8x128xf32, #tpu.memory_space<vmem>>, vector<8x128xf32>,
    } else {
    }
    return
  }
  func.func @transform_0(%arg0: i32, %arg1: i32, %arg2: i32) -> (i32, i32) {
    %c0_i32 = arith.constant 0 : i32
    return %arg0, %arg2 : i32, i32
  }
  func.func @transform_1(%arg0: i32, %arg1: i32, %arg2: i32) -> (i32, i32) {
    %c0_i32 = arith.constant 0 : i32
    return %arg1, %arg2 : i32, i32
  }
  func.func @transform_2(%arg0: i32, %arg1: i32, %arg2: i32) -> (i32, i32) {
    %c0_i32 = arith.constant 0 : i32
    %c0_i32_0 = arith.constant 0 : i32
    return %c0_i32, %arg1 : i32, i32
  }
  func.func @transform_3(%arg0: i32, %arg1: i32, %arg2: i32) -> (i32, i32) {
    %c0_i32 = arith.constant 0 : i32
    return %arg0, %arg1 : i32, i32
  }
}

</mosaic_0001>

<bundles_post_ra>
// kernel: tpu_custom_call.1
= control target key start
LH: loop header
LB: loop body
LE: loop exit
PB: predicated region body
PF: predicated region fallthrough
CT: control target
= control target key end

     0   :  { %8 = vsyncpa [#allocation4], 0  ;;  %s432_s0 = inlined_call_operand.hbm [shape: f32[8,128], index: 0, kind: input, shape index: {}]   ;;  %s433_s1 = inlined_call_operand.hbm [shape: f32[128,128], index: 1, kind: input, shape index: {}]   ;;  %s434_s2 = inlined_call_operand.hbm [shape: f32[1,128], index: 2, kind: input, shape index: {}]   ;;  %s435_s3 = inlined_call_operand.hbm [shape: f32[8,128], index: 3, kind: output, shape index: {}]  }
   0x1   :  { %9 = vsyncpa [#allocation7], 0 }
   0x2   :  { %10 = vsyncpa [#allocation5], 0  ;;  %s355_s12 = smov [#allocation6]   ;;  %s261_s16 = scalar_lea.hbm %s433_s1, 2048 }
   0x3   :  { %s26_s13 = sshll.u32 %s355_s12, 4  ;;  %p262_p0 = scmp.ne.s32.totalorder %s433_s1, %s261_s16  ;;  %s27_s13 = int_to_ptr.vmem [resolvable:$true] %s26_s13 }
   0x4   :  { %p265_p1 = scmp.lt.u32.totalorder %s261_s16, %s433_s1 }
   0x6   :  { %p267_p2 = pnand %p265_p1, %p262_p0 }
   0x8   :  { %270 = shalt.err (!%p267_p2)
}
   0x9   :  { %s271_s21 = scalar_lea.vmem %s27_s13, 2048  ;;  %p276_p4 = scmp.lt.s32.totalorder %s27_s13, %s27_s13 }
   0xa   :  { %p272_p3 = scmp.ne.s32.totalorder %s27_s13, %s271_s21  ;;  %p277_p5 = scmp.lt.s32.totalorder %s271_s21, %s271_s21 }
   0xc   :  { %p278_p6 = por %p277_p5, %p276_p4 }
   0xe   :  { %p279_p7 = pnand %p278_p6, %p272_p3 }
  0x10   :  { %282 = shalt.err (!%p279_p7)
}
  0x11   :  { %s356_s22 = smov 128   ;;  %s357_s23 = smov 8  }
  0x12   :  { %32 = dma.hbm_to_vmem [thread:$0]  %s433_s1, 2048, %s27_s13, [#allocation7], %s356_s22, %s356_s22, %s357_s23  }
  0x13   :  { %s358_s26 = smov [#allocation3]   ;;  %s359_s28 = smov [#allocation8]  }
  0x14   :  { %s17_s27 = sshll.u32 %s358_s26, 4  ;;  %s39_s29 = sshll.u32 %s359_s28, 4  ;;  %s18_s27 = int_to_ptr.vmem [resolvable:$true] %s17_s27  ;;  %s40_s29 = int_to_ptr.vmem [resolvable:$true] %s39_s29 }
  0x15   :  { %s283_s5 = scalar_lea.hbm %s432_s0, 128 }
  0x16   :  { %p284_p8 = scmp.ne.s32.totalorder %s432_s0, %s283_s5  ;;  %p287_p9 = scmp.lt.u32.totalorder %s283_s5, %s432_s0 }
  0x18   :  { %p289_p10 = pnand %p287_p9, %p284_p8 }
  0x1a   :  { %292 = shalt.err (!%p289_p10)
}
  0x1b   :  { %s293_s1 = scalar_lea.vmem %s18_s27, 128  ;;  %p298_p12 = scmp.lt.s32.totalorder %s18_s27, %s18_s27 }
  0x1c   :  { %p294_p11 = scmp.ne.s32.totalorder %s18_s27, %s293_s1  ;;  %p299_p13 = scmp.lt.s32.totalorder %s293_s1, %s293_s1 }
  0x1e   :  { %p300_p0 = por %p299_p13, %p298_p12 }
  0x20   :  { %p301_p1 = pnand %p300_p0, %p294_p11 }
  0x22   :  { %304 = shalt.err (!%p301_p1)
}
  0x23   :  { %20 = dma.hbm_to_vmem [thread:$0]  %s432_s0, 128, %s18_s27, [#allocation4]  }
  0x24   :  { %s305_s14 = scalar_lea.hbm %s434_s2, 16 }
  0x25   :  { %p306_p2 = scmp.ne.s32.totalorder %s434_s2, %s305_s14  ;;  %p309_p3 = scmp.lt.u32.totalorder %s305_s14, %s434_s2 }
  0x27   :  { %p311_p4 = pnand %p309_p3, %p306_p2 }
  0x29   :  { %314 = shalt.err (!%p311_p4)
}
  0x2a   :  { %s315_s19 = scalar_lea.vmem %s40_s29, 16  ;;  %s319_s20 = scalar_lea.vmem %s40_s29, 32 }
  0x2b   :  { %p316_p5 = scmp.ne.s32.totalorder %s40_s29, %s315_s19  ;;  %p320_p6 = scmp.lt.s32.totalorder %s40_s29, %s40_s29 }
  0x2c   :  { %p321_p7 = scmp.lt.s32.totalorder %s319_s20, %s315_s19 }
  0x2e   :  { %p322_p8 = por %p321_p7, %p320_p6 }
  0x30   :  { %p323_p9 = pnand %p322_p8, %p316_p5 }
  0x32   :  { %326 = shalt.err (!%p323_p9)
}
  0x33   :  { %42 = dma.hbm_to_vmem [thread:$0]  %s434_s2, 16, %s40_s29, [#allocation7]  }
  0x34   :  { %349 = dma.done.wait [#allocation4], 128  }
  0x35   :  { %350 = vsyncadd [#allocation4], 4294967168 }
  0x36   :  { %351 = dma.done.wait [#allocation7], 2064  }
  0x37   :  { %352 = vsyncadd [#allocation7], 4294965232  ;;  %v360_v0 = vmov 0.0|0.0   ;;  %vm361_vm0 = vmmov 0   ;;  %v362_v1 = vmov 0.0   ;;  %v66_v2 = vld [vmem:[#allocation6] sm:$0xff] }
  0x38   :  { %228 = vmatprep.subr.bf16.mxu0 %v360_v0  ;;  %225 = vmatprep.mubr.msk.f32.mxu0 %vm361_vm0, %v362_v1  ;;  %v67_v3 = vld [vmem:[#allocation6 + $0x8] sm:$0xff]  ;;  %v68_v5 = vld [vmem:[#allocation6 + $0x10] sm:$0xff]  ;;  %v69_v6 = vld [vmem:[#allocation6 + $0x18] sm:$0xff]  ;;  %s363_s2 = smov [#allocation9]  }
  0x39   :  { %v229_v4 = vpack.c.bf16 %v67_v3, %v66_v2  ;;  %v232_v7 = vpack.c.bf16 %v69_v6, %v68_v5  ;;  %v70_v8 = vld [vmem:[#allocation6 + $0x20] sm:$0xff]  ;;  %v71_v9 = vld [vmem:[#allocation6 + $0x28] sm:$0xff]  ;;  %v72_v11 = vld [vmem:[#allocation6 + $0x30] sm:$0xff]  ;;  %s165_s22 = sshll.u32 %s363_s2, 4  ;;  %s166_s22 = int_to_ptr.vmem [resolvable:$true] %s165_s22 }
  0x3a   :  { %v235_v10 = vpack.c.bf16 %v71_v9, %v70_v8  ;;  %v73_v12 = vld [vmem:[#allocation6 + $0x38] sm:$0xff]  ;;  %v74_v14 = vld [vmem:[#allocation6 + $0x40] sm:$0xff]  ;;  %v75_v15 = vld [vmem:[#allocation6 + $0x48] sm:$0xff]  ;;  %s327_s23 = scalar_lea.vmem %s166_s22, 128  ;;  %p332_p11 = scmp.lt.s32.totalorder %s166_s22, %s166_s22 }
  0x3b   :  { %230 = vmatpush3.bf16.xpose.msra.mxu0 %v229_v4  ;;  %v238_v13 = vpack.c.bf16 %v73_v12, %v72_v11  ;;  %v241_v16 = vpack.c.bf16 %v75_v15, %v74_v14  ;;  %v76_v17 = vld [vmem:[#allocation6 + $0x50] sm:$0xff]  ;;  %v77_v18 = vld [vmem:[#allocation6 + $0x58] sm:$0xff]  ;;  %v78_v20 = vld [vmem:[#allocation6 + $0x60] sm:$0xff]  ;;  %p328_p10 = scmp.ne.s32.totalorder %s166_s22, %s327_s23  ;;  %p333_p12 = scmp.lt.s32.totalorder %s327_s23, %s327_s23 }
  0x3c   :  { %231 = vmatprep.subr.bf16.mxu0 %v360_v0  ;;  %v244_v19 = vpack.c.bf16 %v77_v18, %v76_v17  ;;  %v79_v21 = vld [vmem:[#allocation6 + $0x68] sm:$0xff]  ;;  %v80_v23 = vld [vmem:[#allocation6 + $0x70] sm:$0xff]  ;;  %v81_v24 = vld [vmem:[#allocation6 + $0x78] sm:$0xff] }
  0x3d   :  { %v247_v22 = vpack.c.bf16 %v79_v21, %v78_v20  ;;  %v250_v25 = vpack.c.bf16 %v81_v24, %v80_v23  ;;  %v65_v26 = vld [vmem:[#allocation3] sm:$0xff]  ;;  %v175_v27 = vld [vmem:[#allocation8] ss:$0 sm:$0xff]  ;;  %p334_p13 = por %p333_p12, %p332_p11 }
  0x3f   :  { %p335_p0 = pnand %p334_p13, %p328_p10 }
  0x43   :  { %233 = vmatpush3.bf16.xpose.msra.mxu0 %v232_v7 }
  0x44   :  { %234 = vmatprep.subr.bf16.mxu0 %v360_v0 }
  0x4b   :  { %236 = vmatpush3.bf16.xpose.msra.mxu0 %v235_v10 }
  0x4c   :  { %237 = vmatprep.subr.bf16.mxu0 %v360_v0 }
  0x53   :  { %239 = vmatpush3.bf16.xpose.msra.mxu0 %v238_v13 }
  0x54   :  { %240 = vmatprep.subr.bf16.mxu0 %v360_v0 }
  0x5b   :  { %242 = vmatpush3.bf16.xpose.msra.mxu0 %v241_v16 }
  0x5c   :  { %243 = vmatprep.subr.bf16.mxu0 %v360_v0 }
  0x63   :  { %245 = vmatpush3.bf16.xpose.msra.mxu0 %v244_v19 }
  0x64   :  { %246 = vmatprep.subr.bf16.mxu0 %v360_v0 }
  0x6b   :  { %248 = vmatpush3.bf16.xpose.msra.mxu0 %v247_v22 }
  0x6c   :  { %249 = vmatprep.subr.bf16.mxu0 %v360_v0 }
  0x73   :  { %251 = vmatpush3.bf16.xpose.msra.mxu0 %v250_v25 }
  0x7a   :  { %226 = vmatmul.mubr.f32.vlgmr.msra.gmra.mrb[0].mxu0 %v65_v26 }
 0x14d   :  { %v148_v28 = vpop.f32.mrb[0].mxu0 }
 0x14e   :  { %v152_v29 = vadd.f32 %v175_v27, %v148_v28  ;;  %v227_v30 = vpop.f32.mrb[1].mxu0 }
 0x150   :  { %158 = vst [vmem:[#allocation9] sm:$0xff] %v152_v29 }
 0x151   :  { %338 = shalt.err (!%p335_p0)
}
 0x152   :  { %s339_s26 = scalar_lea.hbm %s435_s3, 128 }
 0x153   :  { %p340_p1 = scmp.ne.s32.totalorder %s435_s3, %s339_s26  ;;  %p343_p2 = scmp.lt.u32.totalorder %s339_s26, %s435_s3 }
 0x155   :  { %p345_p3 = pnand %p343_p2, %p340_p1 }
 0x157   :  { %348 = shalt.err (!%p345_p3)
}
 0x158   :  { %168 = dma.vmem_to_hbm [thread:$0]  %s166_s22, 128, %s435_s3, [#allocation5]  }
 0x159   :  { %353 = dma.done.wait [#allocation5], 128  }
 0x15a   :  { %354 = vsyncadd [#allocation5], 4294967168 }
 0x15b   :  { %172 = vsyncpa [#allocation4], 1 }
 0x15c   :  { %173 = vsyncpa [#allocation7], 1 }
 0x15d   :  { %174 = vsyncpa [#allocation5], 1 }

</bundles_post_ra>
